<compile_context>
chip_gen: v7x
topology: tpu7x:2x2x1
jax: 0.10.0
libtpu: 0.0.40
codegen_flags: <defaults>
</compile_context>

<pallas_src>
import functools
import math

import jax
import jax.numpy as jnp
from jax.experimental import pallas as pl
from jax.experimental.pallas import tpu as pltpu


def _round_up(x, m):
    return (x + m - 1) // m * m


def _sin_pos_emb_kernel(t_ref, w_ref, b_ref, out_ref, *, hp, n_r, emb_scale):
    # t_ref:   [tb, 1]                f32   timesteps
    # w_ref:   [2*hp + n_r, n_pad]    bf16  (w1_sin | w1_cos | w2), 16-row aligned
    # b_ref:   [8, n_pad]             f32   row 0 = b1, row 1 = b2
    # out_ref: [tb, n_pad]            f32
    # Frequency table computed in-kernel (iota + exp on the EUP); rows >=
    # half_dim multiply zero weight rows so they never contribute.
    k = jax.lax.broadcasted_iota(jnp.int32, (1, hp), 1).astype(jnp.float32)
    freqs = jnp.exp(k * (-emb_scale))                          # [1, hp]

    emb = t_ref[...] * freqs                                   # [tb, hp] f32
    s = jnp.sin(emb)
    c = jnp.cos(emb)

    w1_sin = w_ref[0:hp, :]                                    # [hp, n_pad] bf16
    w1_cos = w_ref[hp:2 * hp, :]                               # [hp, n_pad] bf16
    b1 = b_ref[0:1, :]                                         # [1, n_pad]  f32

    h = (jnp.dot(s.astype(jnp.bfloat16), w1_sin, preferred_element_type=jnp.float32)
         + jnp.dot(c.astype(jnp.bfloat16), w1_cos, preferred_element_type=jnp.float32)
         + b1)
    h = h * jax.nn.sigmoid(h)                                  # SiLU in f32; padded lanes stay 0

    w2 = w_ref[2 * hp:2 * hp + n_r, :]                         # [n_r, n_pad] bf16
    b2 = b_ref[1:2, :]                                         # [1, n_pad]   f32

    out = jnp.dot(h[:, :n_r].astype(jnp.bfloat16), w2,
                  preferred_element_type=jnp.float32) + b2
    out_ref[...] = out.astype(out_ref.dtype)


def pack_params(params, latent_dim):
    """Pack params into a bf16 weight slab + small f32 bias slab.

    Weight slab (width n_pad = round_up(n,128), sections 16-row aligned):
      [0        : hp      )  w1_sin  (first half_dim rows of w1)
      [hp       : 2*hp    )  w1_cos  (second half_dim rows of w1)
      [2*hp     : +n_r    )  w2      (contraction rows padded only to 16)
    Bias slab (f32, 8 x n_pad): row 0 = b1, row 1 = b2.
    """
    n = latent_dim
    half = n // 8
    hp = _round_up(half, 16)
    n_r = _round_up(n, 16)
    n_pad = _round_up(n, 128)

    w1, b1, w2, b2 = params["w1"], params["b1"], params["w2"], params["b2"]

    def pad2(x, rows, cols):
        return jnp.pad(x, ((0, rows - x.shape[0]), (0, cols - x.shape[1])))

    w_slab = jnp.concatenate(
        [
            pad2(w1[:half], hp, n_pad),
            pad2(w1[half:], hp, n_pad),
            pad2(w2, n_r, n_pad),
        ],
        axis=0,
    ).astype(jnp.bfloat16)

    b_slab = pad2(jnp.stack([b1, b2], axis=0), 8, n_pad).astype(jnp.float32)
    return w_slab, b_slab


def sinusoidal_pos_emb(t, w_slab, b_slab, latent_dim, *,
                       block_b=256, slice_output=True):
    """t: [B] float32.  w_slab/b_slab: pack_params(...) output.

    Returns [B, latent_dim] (or the padded [b_pad, n_pad] block when
    slice_output=False, whose extra lanes/rows are exact zeros / junk rows).
    Batch as many timesteps as possible per call to amortize launch + slab DMA.
    """
    n = latent_dim
    assert n % 8 == 0 and n // 8 > 1, "latent_dim must be a multiple of 8 and >= 16"
    half = n // 8
    hp = _round_up(half, 16)
    n_r = _round_up(n, 16)
    n_pad = _round_up(n, 128)
    emb_scale = math.log(10000.0) / (half - 1)

    B = t.shape[0]
    b_pad = _round_up(max(B, 1), 8)
    if b_pad > block_b:
        tb = block_b
        b_pad = _round_up(b_pad, tb)
    else:
        tb = b_pad
    grid = (b_pad // tb,)

    t2d = t.astype(jnp.float32).reshape(B, 1)
    if b_pad != B:
        t2d = jnp.pad(t2d, ((0, b_pad - B), (0, 0)))

    # VMEM budget: resident slabs + double-buffered t/out blocks + headroom.
    slab_bytes = (w_slab.size * w_slab.dtype.itemsize
                  + b_slab.size * b_slab.dtype.itemsize)
    io_bytes = 2 * 2 * (tb * n_pad + tb) * 4
    need = slab_bytes + io_bytes + (2 << 20)
    vmem_limit = int(min(need, 100 << 20)) if need > (16 << 20) else None
    # TODO(synk): for latent_dim ~4k+ (slab approaching v7x's 64 MiB physical
    # VMEM) tile the second matmul over output columns instead of keeping the
    # whole w2 resident.

    kernel = functools.partial(
        _sin_pos_emb_kernel, hp=hp, n_r=n_r, emb_scale=emb_scale)

    out = pl.pallas_call(
        kernel,
        out_shape=jax.ShapeDtypeStruct((b_pad, n_pad), jnp.float32),
        grid=grid,
        in_specs=[
            pl.BlockSpec((tb, 1), lambda i: (i, 0)),
            pl.BlockSpec(w_slab.shape, lambda i: (0, 0)),
            pl.BlockSpec(b_slab.shape, lambda i: (0, 0)),
        ],
        out_specs=pl.BlockSpec((tb, n_pad), lambda i: (i, 0)),
        compiler_params=pltpu.CompilerParams(
            dimension_semantics=("parallel",),
            vmem_limit_bytes=vmem_limit,
        ),
    )(t2d, w_slab, b_slab)

    if slice_output:
        return out[:B, :n]
    return out


def init_params(latent_dim, key):
    """Synthetic parameters (shapes match nn.Linear in the module).

    Weights are stored transposed ([in, out]) for the kernel's x @ W layout.
    """
    k1, k2, k3, k4 = jax.random.split(key, 4)
    in1 = latent_dim // 4
    w1 = jax.random.normal(k1, (in1, latent_dim), jnp.float32) * (1.0 / math.sqrt(in1))
    b1 = jax.random.normal(k2, (latent_dim,), jnp.float32) * 0.01
    w2 = jax.random.normal(k3, (latent_dim, latent_dim), jnp.float32) * (1.0 / math.sqrt(latent_dim))
    b2 = jax.random.normal(k4, (latent_dim,), jnp.float32) * 0.01
    return {"w1": w1, "b1": b1, "w2": w2, "b2": b2}


def _reference(t, params):
    """Pure-JAX f32 reference mirroring the PyTorch forward."""
    latent_dim = params["w2"].shape[0]
    half_dim = latent_dim // 8
    emb_scale = math.log(10000.0) / (half_dim - 1)
    freqs = jnp.exp(jnp.arange(half_dim, dtype=jnp.float32) * -emb_scale)
    emb = t[:, None] * freqs[None, :]
    emb = jnp.concatenate([jnp.sin(emb), jnp.cos(emb)], axis=1)
    h = emb @ params["w1"] + params["b1"]
    h = h * jax.nn.sigmoid(h)
    return h @ params["w2"] + params["b2"]


if __name__ == "__main__":
    latent_dim = 32   # lin1: 8 -> 32, lin2: 32 -> 32, sinusoid half_dim = 4

    key = jax.random.PRNGKey(0)
    kp, kt1, kt2 = jax.random.split(key, 3)
    params = init_params(latent_dim, kp)
    w_slab, b_slab = pack_params(params, latent_dim)   # pack once, reuse every call

    # bf16 weights on the MXU (f32 accumulation) -> loosened tolerance vs f32 ref.
    tol = dict(atol=5e-2, rtol=5e-2)

    # 1) Small call (single grid step).
    t_small = jax.random.uniform(kt1, (8,), jnp.float32, minval=0.0, maxval=1000.0)
    out_small = jax.block_until_ready(
        sinusoidal_pos_emb(t_small, w_slab, b_slab, latent_dim))
    ref_small = _reference(t_small, params)
    assert out_small.shape == (8, latent_dim)
    assert jnp.allclose(out_small, ref_small, **tol), "mismatch vs reference (B=8)"

    # 2) Batched-timestep call (grid over B, 'parallel' -> dual-TC on v7x),
    #    amortizing launch + slab DMA over many timesteps.
    t_big = jax.random.uniform(kt2, (300,), jnp.float32, minval=0.0, maxval=1000.0)
    out_big = jax.block_until_ready(
        sinusoidal_pos_emb(t_big, w_slab, b_slab, latent_dim))
    ref_big = _reference(t_big, params)
    assert out_big.shape == (300, latent_dim)
    assert jnp.allclose(out_big, ref_big, **tol), "mismatch vs reference (B=300)"

    print("KERNEL_OK")
</pallas_src>

<mosaic_0001>
module attributes {stable_mosaic.version = 11 : i64} {
  func.func @_sin_pos_emb_kernel(%arg0: i32, %arg1: memref<8x1xf32, #tpu.memory_space<vmem>>, %arg2: memref<64x128xbf16, #tpu.memory_space<vmem>>, %arg3: memref<8x128xf32, #tpu.memory_space<vmem>>, %arg4: memref<8x128xf32, #tpu.memory_space<vmem>>) attributes {dimension_semantics = [#tpu.dimension_semantics<parallel>], iteration_bounds = array<i64: 1>, scalar_prefetch = 0 : i64, scratch_operands = 0 : i64, tpu.core_type = #tpu.core_type<tc>, window_params = [{transform_indices = @transform_0, window_bounds = array<i64: 8, 1>}, {pipeline_mode = #tpu.pipeline_mode<synchronous>, transform_indices = @transform_1, window_bounds = array<i64: 64, 128>}, {pipeline_mode = #tpu.pipeline_mode<synchronous>, transform_indices = @transform_2, window_bounds = array<i64: 8, 128>}, {transform_indices = @transform_3, window_bounds = array<i64: 8, 128>}]} {
    %0 = tpu.iota {dimensions = array<i32: 1>} : vector<1x16xi32>
    %1 = arith.sitofp %0 : vector<1x16xi32> to vector<1x16xf32>
    %cst = arith.constant -3.07011342 : f32
    %2 = vector.broadcast %cst : f32 to vector<1x16xf32>
    %3 = arith.mulf %1, %2 : vector<1x16xf32>
    %4 = math.exp %3 : vector<1x16xf32>
    %c0 = arith.constant 0 : index
    %c0_0 = arith.constant 0 : index
    %5 = vector.load %arg1[%c0, %c0_0] : memref<8x1xf32, #tpu.memory_space<vmem>>, vector<8x1xf32>
    %6 = vector.broadcast %5 : vector<8x1xf32> to vector<8x16xf32>
    %7 = vector.broadcast %4 : vector<1x16xf32> to vector<8x16xf32>
    %8 = arith.mulf %6, %7 : vector<8x16xf32>
    %9 = math.sin %8 : vector<8x16xf32>
    %10 = math.cos %8 : vector<8x16xf32>
    %c0_1 = arith.constant 0 : index
    %c0_2 = arith.constant 0 : index
    %11 = vector.load %arg2[%c0_1, %c0_2] : memref<64x128xbf16, #tpu.memory_space<vmem>>, vector<16x128xbf16>
    %c16 = arith.constant 16 : index
    %c0_3 = arith.constant 0 : index
    %12 = vector.load %arg2[%c16, %c0_3] : memref<64x128xbf16, #tpu.memory_space<vmem>>, vector<16x128xbf16>
    %c0_4 = arith.constant 0 : index
    %c0_5 = arith.constant 0 : index
    %13 = vector.load %arg3[%c0_4, %c0_5] : memref<8x128xf32, #tpu.memory_space<vmem>>, vector<1x128xf32>
    %14 = arith.truncf %9 : vector<8x16xf32> to vector<8x16xbf16>
    %cst_6 = arith.constant dense<0.000000e+00> : vector<8x128xf32>
    %15 = tpu.matmul %14, %11, %cst_6 {dimension_numbers = #tpu.dot_dimension_numbers<[1], [0], [0], [1], [0, 0, 1, 1], [], []>} : vector<8x16xbf16>, vector<16x128xbf16>, vector<8x128xf32> -> vector<8x128xf32>
    %16 = arith.truncf %10 : vector<8x16xf32> to vector<8x16xbf16>
    %cst_7 = arith.constant dense<0.000000e+00> : vector<8x128xf32>
    %17 = tpu.matmul %16, %12, %cst_7 {dimension_numbers = #tpu.dot_dimension_numbers<[1], [0], [0], [1], [0, 0, 1, 1], [], []>} : vector<8x16xbf16>, vector<16x128xbf16>, vector<8x128xf32> -> vector<8x128xf32>
    %18 = arith.addf %15, %17 : vector<8x128xf32>
    %19 = vector.broadcast %13 : vector<1x128xf32> to vector<8x128xf32>
    %20 = arith.addf %18, %19 : vector<8x128xf32>
    %21 = arith.negf %20 : vector<8x128xf32>
    %22 = math.exp %21 : vector<8x128xf32>
    %cst_8 = arith.constant 1.000000e+00 : f32
    %23 = vector.broadcast %cst_8 : f32 to vector<8x128xf32>
    %24 = arith.addf %23, %22 : vector<8x128xf32>
    %25 = arith.divf %23, %24 : vector<8x128xf32>
    %26 = arith.mulf %20, %25 : vector<8x128xf32>
    %c32 = arith.constant 32 : index
    %c0_9 = arith.constant 0 : index
    %27 = vector.load %arg2[%c32, %c0_9] : memref<64x128xbf16, #tpu.memory_space<vmem>>, vector<32x128xbf16>
    %c1 = arith.constant 1 : index
    %c0_10 = arith.constant 0 : index
    %28 = vector.load %arg3[%c1, %c0_10] : memref<8x128xf32, #tpu.memory_space<vmem>>, vector<1x128xf32>
    %29 = vector.extract_strided_slice %26 {offsets = [0, 0], sizes = [8, 32], strides = [1, 1]} : vector<8x128xf32> to vector<8x32xf32>
    %30 = arith.truncf %29 : vector<8x32xf32> to vector<8x32xbf16>
    %cst_11 = arith.constant dense<0.000000e+00> : vector<8x128xf32>
    %31 = tpu.matmul %30, %27, %cst_11 {dimension_numbers = #tpu.dot_dimension_numbers<[1], [0], [0], [1], [0, 0, 1, 1], [], []>} : vector<8x32xbf16>, vector<32x128xbf16>, vector<8x128xf32> -> vector<8x128xf32>
    %32 = vector.broadcast %28 : vector<1x128xf32> to vector<8x128xf32>
    %33 = arith.addf %31, %32 : vector<8x128xf32>
    %c0_12 = arith.constant 0 : index
    %c0_13 = arith.constant 0 : index
    %34 = vector.load %arg4[%c0_12, %c0_13] : memref<8x128xf32, #tpu.memory_space<vmem>>, vector<8x128xf32>
    tpu.vector_store %arg4[%c0_12, %c0_13], %33 {strides = array<i32>} : memref<8x128xf32, #tpu.memory_space<vmem>>, vector<8x128xf32>,
    return
  }
  func.func @transform_0(%arg0: i32) -> (i32, i32) {
    %c0_i32 = arith.constant 0 : i32
    %c0_i32_0 = arith.constant 0 : i32
    return %arg0, %c0_i32 : i32, i32
  }
  func.func @transform_1(%arg0: i32) -> (i32, i32) {
    %c0_i32 = arith.constant 0 : i32
    %c0_i32_0 = arith.constant 0 : i32
    %c0_i32_1 = arith.constant 0 : i32
    return %c0_i32, %c0_i32_0 : i32, i32
  }
  func.func @transform_2(%arg0: i32) -> (i32, i32) {
    %c0_i32 = arith.constant 0 : i32
    %c0_i32_0 = arith.constant 0 : i32
    %c0_i32_1 = arith.constant 0 : i32
    return %c0_i32, %c0_i32_0 : i32, i32
  }
  func.func @transform_3(%arg0: i32) -> (i32, i32) {
    %c0_i32 = arith.constant 0 : i32
    %c0_i32_0 = arith.constant 0 : i32
    return %arg0, %c0_i32 : i32, i32
  }
}

</mosaic_0001>

<bundles_post_ra>
// kernel: tpu_custom_call.1
= control target key start
LH: loop header
LB: loop body
LE: loop exit
PB: predicated region body
PF: predicated region fallthrough
CT: control target
= control target key end

     0   :  { %8 = vsyncpa [#allocation3], 0  ;;  %s672_s0 = inlined_call_operand.vmem [shape: f32[8,1], index: 0, kind: input, shape index: {}]   ;;  %s673_s1 = inlined_call_operand.hbm [shape: bf16[64,128], index: 1, kind: input, shape index: {}]   ;;  %s674_s2 = inlined_call_operand.vmem [shape: f32[8,128], index: 2, kind: input, shape index: {}]   ;;  %s675_s3 = inlined_call_operand.hbm [shape: f32[8,128], index: 3, kind: output, shape index: {}]  }
   0x1   :  { %9 = vsyncpa [#allocation4], 0  ;;  %s575_s12 = smov [#allocation2]   ;;  %s527_s16 = scalar_lea.hbm %s673_s1, 512 }
   0x2   :  { %s17_s13 = sshll.u32 %s575_s12, 4  ;;  %p528_p0 = scmp.ne.s32.totalorder %s673_s1, %s527_s16  ;;  %s18_s13 = int_to_ptr.vmem [resolvable:$true] %s17_s13 }
   0x3   :  { %p531_p1 = scmp.lt.u32.totalorder %s527_s16, %s673_s1 }
   0x5   :  { %p533_p2 = pnand %p531_p1, %p528_p0 }
   0x7   :  { %536 = shalt.err (!%p533_p2)
}
   0x8   :  { %s537_s21 = scalar_lea.vmem %s18_s13, 512  ;;  %p542_p4 = scmp.lt.s32.totalorder %s18_s13, %s18_s13 }
   0x9   :  { %p538_p3 = scmp.ne.s32.totalorder %s18_s13, %s537_s21  ;;  %p543_p5 = scmp.lt.s32.totalorder %s537_s21, %s537_s21 }
   0xb   :  { %p544_p6 = por %p543_p5, %p542_p4 }
   0xd   :  { %p545_p7 = pnand %p544_p6, %p538_p3 }
   0xf   :  { %548 = shalt.err (!%p545_p7)
}
  0x10   :  { %s576_s22 = smov 64   ;;  %s577_s23 = smov 4  }
  0x11   :  { %23 = dma.hbm_to_vmem [thread:$0]  %s673_s1, 512, %s18_s13, [#allocation3], %s576_s22, %s576_s22, %s577_s23  }
  0x12   :  { %571 = dma.done.wait [#allocation3], 512  }
  0x13   :  { %572 = vsyncadd [#allocation3], 4294966784  ;;  %v578_v0 = vmov 0   ;;  %v36_v1 = vld [vmem:[%s672_s0] sm:$0xff]  ;;  %v513_v2 = vld [vmem:[#allocation2 + $0x8] sm:$0xff]   ;;  %v579_v4 = vmov 0.0   ;;  %v30_v5 = vlaneseq }
  0x14   :  { %512 = vset.pattern.permute.xlu0 %v578_v0  ;;  %v514_v3 = vld [vmem:[#allocation2] sm:$0xff]   ;;  %475 = vmatprep.subr.bf16.mxu0 %v579_v4  ;;  %vm580_vm0 = vmmov 0   ;;  %v581_v23 = vmov 683565275   ;;  %v582_v25 = vmov 2475754826  }
  0x15   :  { %39 = vperm.xlu0 %512, %v36_v1   ;;  %481 = vmatprep.subr.bf16.mxu1 %v579_v4  ;;  %v31_v6 = vand.u32 127, %v30_v5  ;;  %v583_v28 = vmov 2131351028   ;;  %v584_v31 = vmov 2102212464   ;;  %s587_s30 = smov [#allocation5]  }
  0x16   :  { %476 = vmatpush3.bf16.msra.mxu0 %v513_v2  ;;  %482 = vmatpush3.bf16.msra.mxu1 %v514_v3  ;;  %v585_v34 = vmov 920167782   ;;  %v586_v37 = vmov 1326507024   ;;  %s441_s4 = sshll.u32 %s587_s30, 4  ;;  %s442_s4 = int_to_ptr.vmem [resolvable:$true] %s441_s4 }
  0x17   :  { %477 = vmatprep.mubr.msk.bf16.mxu0 %vm580_vm0, %v579_v4  ;;  %483 = vmatprep.mubr.msk.bf16.mxu1 %vm580_vm0, %v579_v4  ;;  %v32_v7 = vcvt.s32.f32 %v31_v6  ;;  %s549_s5 = scalar_lea.vmem %s442_s4, 128  ;;  %p554_p9 = scmp.lt.s32.totalorder %s442_s4, %s442_s4 }
  0x18   :  { %487 = vmatprep.subr.bf16.mxu0 %v579_v4  ;;  %p550_p8 = scmp.ne.s32.totalorder %s442_s4, %s549_s5  ;;  %p555_p10 = scmp.lt.s32.totalorder %s549_s5, %s549_s5 }
  0x19   :  { %v33_v8 = vmul.f32 -3.0701134, %v32_v7 }
  0x1a   :  { %p556_p11 = por %p555_p10, %p554_p9 }
  0x1b   :  { %v34_v9 = vmul.f32 1.442695, %v33_v8 }
  0x1c   :  { %p557_p12 = pnand %p556_p11, %p550_p8 }
  0x1d   :  { %517 = vpow2.f32 %v34_v9 }
  0x27   :  { %v518_v10 = vpop.eup %517 }
  0x94   :  { %v40_v11 = vpop.permute.xlu0 %39 }
  0x95   :  { %v630_v12 = vmul.f32 %v518_v10, %v40_v11 }
  0x97   :  { %v46_v13 = vand.u32 2139095040, %v630_v12  ;;  %v43_v17 = vand.u32 2147483647, %v630_v12  ;;  %vm45_vm8 = vcmp.lt.s32.totalorder %v630_v12, 0 }
  0x99   :  { %v47_v14 = vshrl.u32 %v46_v13, 23  ;;  %v50_v20 = vand.u32 8388607, %v43_v17  ;;  %vm44_vm9 = vcmp.le.f32.partialorder %v43_v17, 0.7853982 }
  0x9b   :  { %v450_v15 = vadd.s32 4294967169, %v47_v14  ;;  %v51_v39 = vor.u32 8388608, %v50_v20 }
  0x9d   :  { %v53_v16 = vadd.s32 1, %v450_v15  ;;  %v91_v53 = vshll.u32 %v51_v39, 8 }
  0x9f   :  { %vm54_vm1 = vcmp.gt.s32.totalorder %v53_v16, 0 }
  0xa0   :  { %v55_v18 = vsel %vm54_vm1, %v53_v16, 0  ;;  %vm135_vm1 = vweird.f32 %v630_v12 }
  0xa1   :  { %v57_v19 = vand.u32 31, %v55_v18  ;;  %v56_v22 = vshrl.u32 %v55_v18, 5 }
  0xa3   :  { %v58_v21 = vsub.s32 32, %v57_v19  ;;  %v60_v24 = vshll.u32 %v581_v23, %v57_v19  ;;  %v63_v26 = vshll.u32 %v582_v25, %v57_v19  ;;  %v66_v30 = vshll.u32 %v583_v28, %v57_v19 }
  0xa4   :  { %v69_v33 = vshll.u32 %v584_v31, %v57_v19  ;;  %v72_v36 = vshll.u32 %v585_v34, %v57_v19  ;;  %vm75_vm2 = vcmp.lt.s32.totalorder %v56_v22, 1  ;;  %vm78_vm3 = vcmp.lt.s32.totalorder %v56_v22, 4 }
  0xa5   :  { %v61_v27 = vshrl.u32 %v582_v25, %v58_v21  ;;  %v64_v29 = vshrl.u32 %v583_v28, %v58_v21  ;;  %v67_v32 = vshrl.u32 %v584_v31, %v58_v21  ;;  %v70_v35 = vshrl.u32 %v585_v34, %v58_v21 }
  0xa6   :  { %v73_v38 = vshrl.u32 %v586_v37, %v58_v21  ;;  %v59_v48 = vshrl.u32 %v581_v23, %v58_v21  ;;  %vm77_vm4 = vcmp.lt.s32.totalorder %v56_v22, 3  ;;  %vm76_vm5 = vcmp.lt.s32.totalorder %v56_v22, 2 }
  0xa7   :  { %v62_v40 = vor.u32 %v61_v27, %v60_v24  ;;  %v65_v41 = vor.u32 %v64_v29, %v63_v26  ;;  %v68_v42 = vor.u32 %v67_v32, %v66_v30  ;;  %v71_v43 = vor.u32 %v70_v35, %v69_v33 }
  0xa8   :  { %v74_v44 = vor.u32 %v73_v38, %v72_v36 }
  0xa9   :  { %v80_v45 = vsel %vm78_vm3, %v68_v42, 2102212464  ;;  %v83_v46 = vsel %vm75_vm2, %v62_v40, %v65_v41  ;;  %v87_v47 = vsel %vm75_vm2, %v65_v41, %v68_v42  ;;  %v84_v49 = vsel %vm78_vm3, %v71_v43, 920167782 }
  0xaa   :  { %v88_v50 = vsel %vm78_vm3, %v74_v44, 1326507024  ;;  %v85_v51 = vsel %vm77_vm4, %v68_v42, %v84_v49  ;;  %v79_v54 = vsel %vm75_vm2, %v59_v48, %v62_v40  ;;  %v81_v55 = vsel %vm77_vm4, %v65_v41, %v80_v45  ;;  %v515_v49 = vld [vmem:[#allocation2 + $0x10] sm:$0xff]  }
  0xab   :  { %v89_v52 = vsel %vm77_vm4, %v71_v43, %v88_v50  ;;  %v86_v56 = vsel %vm76_vm5, %v83_v46, %v85_v51  ;;  %v82_v62 = vsel %vm76_vm5, %v79_v54, %v81_v55  ;;  %vm263_vm2 = vcmask 130048   ;;  %v516_v50 = vld [vmem:[#allocation2 + $0x18] sm:$0xff]  }
  0xac   :  { %v90_v57 = vsel %vm76_vm5, %v87_v47, %v89_v52  ;;  %v639_v60 = vmul.u32.u64.low %v91_v53, %v86_v56  ;;  %v640_v61 = vmul.u32.u64.high %v91_v53, %v86_v56, %v639_v60  ;;  %v98_v0 = vmul.u32 %v91_v53, %v82_v62 }
  0xad   :  { %v636_v58 = vmul.u32.u64.low %v91_v53, %v90_v57  ;;  %v637_v59 = vmul.u32.u64.high %v91_v53, %v90_v57, %v636_v58 }
  0xae   :  { %v101_v63 = vadd.s32 1, %v640_v61 }
  0xaf   :  { %vm100_vm6 = vc.u32 %v637_v59, %v639_v60  ;;  %v99_v14 = vadd.s32 %v639_v60, %v637_v59 }
  0xb0   :  { %v102_v1 = vsel %vm100_vm6, %v101_v63, %v640_v61 }
  0xb1   :  { %v103_v2 = vadd.s32 %v102_v1, %v98_v0 }
  0xb3   :  { %v104_v3 = vadd.s32 536870912, %v103_v2 }
  0xb5   :  { %v105_v5 = vshrl.u32 %v104_v3, 30 }
  0xb7   :  { %v106_v6 = vshll.u32 %v105_v5, 30  ;;  %v129_v27 = vsub.s32 4, %v105_v5 }
  0xb9   :  { %v107_v7 = vsub.s32 %v103_v2, %v106_v6  ;;  %v130_v30 = vsel %vm45_vm8, %v129_v27, %v105_v5  ;;  %v464_v2 = vld [vmem:[%s674_s2 + $0x1] ss:$0 sm:$0xff] }
  0xba   :  { %v132_v32 = vsel %vm44_vm9, 0, %v130_v30 }
  0xbb   :  { %v109_v8 = vsub.s32 0, %v107_v7  ;;  %v136_v33 = vadd.s32 3, %v132_v32  ;;  %v240_v34 = vand.u32 3, %v132_v32 }
  0xbd   :  { %v451_v9 = vmin.u32 %v109_v8, %v107_v7  ;;  %v137_v35 = vand.u32 3, %v136_v33  ;;  %vm245_vm10 = vcmp.eq.s32.totalorder %v240_v34, 2  ;;  %vm242_vm12 = vcmp.eq.s32.totalorder %v240_v34, 0 }
  0xbe   :  { %vm241_vm14 = vcmp.lt.s32.totalorder %v240_v34, 2 }
  0xbf   :  { %v111_v10 = vclz %v451_v9  ;;  %vm142_vm11 = vcmp.eq.s32.totalorder %v137_v35, 2  ;;  %vm139_vm13 = vcmp.eq.s32.totalorder %v137_v35, 0  ;;  %vm138_vm15 = vcmp.lt.s32.totalorder %v137_v35, 2 }
  0xc1   :  { %v452_v11 = vadd.s32 4294967294, %v111_v10 }
  0xc3   :  { %vm453_vm7 = vcmp.lt.s32.totalorder %v452_v11, 0 }
  0xc4   :  { %v114_v13 = vsel %vm453_vm7, 0, %v452_v11 }
  0xc5   :  { %v115_v15 = vsub.s32 32, %v114_v13  ;;  %v119_v16 = vsub.s32 4294967266, %v114_v13  ;;  %v116_v18 = vshll.u32 %v107_v7, %v114_v13 }
  0xc7   :  { %v117_v19 = vshrl.u32 %v99_v14, %v115_v15  ;;  %v120_v20 = vadd.s32 127, %v119_v16 }
  0xc9   :  { %v118_v21 = vor.u32 %v117_v19, %v116_v18  ;;  %v121_v22 = vshll.u32 %v120_v20, 23 }
  0xcb   :  { %v122_v23 = vor.u32 4788187, %v121_v22  ;;  %v125_v25 = vcvt.s32.f32 %v118_v21 }
  0xcd   :  { %v123_v24 = vand.u32 2147483647, %v122_v23 }
  0xcf   :  { %v126_v26 = vmul.f32 %v125_v25, %v123_v24 }
  0xd1   :  { %v127_v28 = vxor.u32 2147483648, %v126_v26 }
  0xd3   :  { %v128_v29 = vsel %vm45_vm8, %v127_v28, %v126_v26 }
  0xd4   :  { %v131_v31 = vsel %vm44_vm9, %v630_v12, %v128_v29  ;;  %v462_v12 = vld [vmem:[%s674_s2] ss:$0 sm:$0xff] }
  0xd5   :  { %519 = vcosq.f32 %v131_v31 }
  0xd6   :  { %521 = vsinq.f32 %v131_v31 }
  0xdf   :  { %v520_v36 = vpop.eup %519 }
  0xe0   :  { %v522_v37 = vpop.eup %521  ;;  %v143_v38 = vxor.u32 2147483648, %v520_v36 }
  0xe1   :  { %v140_v39 = vxor.u32 2147483648, %v522_v37 }
  0xe2   :  { %v247_v40 = vsel %vm245_vm10, %v143_v38, %v522_v37  ;;  %v144_v17 = vsel %vm142_vm11, %v143_v38, %v522_v37 }
  0xe3   :  { %v244_v41 = vsel %vm242_vm12, %v520_v36, %v140_v39  ;;  %v141_v42 = vsel %vm139_vm13, %v520_v36, %v140_v39 }
  0xe4   :  { %v248_v43 = vsel %vm241_vm14, %v244_v41, %v247_v40  ;;  %v145_v44 = vsel %vm138_vm15, %v141_v42, %v144_v17 }
  0xe5   :  { %v249_v45 = vsel %vm135_vm1, nan, %v248_v43  ;;  %v146_v46 = vsel %vm135_vm1, nan, %v145_v44 }
  0xe6   :  { %v256_v47 = vpack.c.bf16 %v249_v45, %v249_v45  ;;  %v255_v48 = vpack.c.bf16 %v146_v46, %v146_v46 }
  0xe8   :  { %478 = vmatmul.mubr.msk.bf16.vlgmr.msra.gmra.mrb[0].mxu0 %vm263_vm2, %v256_v47  ;;  %484 = vmatmul.mubr.msk.bf16.vlgmr.msra.gmra.mrb[0].mxu1 %vm263_vm2, %v255_v48 }
  0xe9   :  { %491 = vmatprep.mubr.msk.bf16.mxu0 %vm580_vm0, %v579_v4  ;;  %488 = vmatpush3.bf16.msra.mxu0 %v515_v49  ;;  %vm390_vm0 = vcmask 261120  }
  0xea   :  { %489 = vmatprep.subr.bf16.mxu0 %v579_v4 }
  0xed   :  { %490 = vmatpush3.bf16.msra.mxu0 %v516_v50 }
 0x1bb   :  { %v301_v51 = vpop.f32.mrb[0].mxu0  ;;  %v350_v52 = vpop.f32.mrb[0].mxu1 }
 0x1bc   :  { %v351_v53 = vadd.f32 %v350_v52, %v301_v51  ;;  %v479_v54 = vpop.f32.mrb[1].mxu0  ;;  %v485_v55 = vpop.f32.mrb[1].mxu1 }
 0x1bd   :  { %v304_v56 = vpop.f32.mrb[2].mxu0  ;;  %v353_v57 = vpop.f32.mrb[2].mxu1 }
 0x1be   :  { %v360_v58 = vadd.f32 %v462_v12, %v351_v53  ;;  %v480_v59 = vpop.f32.mrb[3].mxu0  ;;  %v486_v60 = vpop.f32.mrb[3].mxu1 }
 0x1c0   :  { %v463_v61 = vmul.f32 -1.442695, %v360_v58 }
 0x1c2   :  { %523 = vpow2.f32 %v463_v61 }
 0x1cc   :  { %v524_v62 = vpop.eup %523 }
 0x1cd   :  { %v364_v4 = vadd.f32 1.0, %v524_v62 }
 0x1cf   :  { %525 = vrcp.f32 %v364_v4 }
 0x1d9   :  { %v526_v63 = vpop.eup %525 }
 0x1da   :  { %v367_v0 = vmul.f32 %v526_v63, %v360_v58 }
 0x1dc   :  { %v373_v1 = vpack.c.bf16 %v367_v0, %v367_v0 }
 0x1de   :  { %492 = vmatmul.mubr.msk.bf16.vlgmr.msra.gmra.mrb[4].mxu0 %vm390_vm0, %v373_v1 }
 0x2b1   :  { %v428_v3 = vpop.f32.mrb[4].mxu0 }
 0x2b2   :  { %v429_v5 = vadd.f32 %v464_v2, %v428_v3  ;;  %v493_v6 = vpop.f32.mrb[5].mxu0 }
 0x2b3   :  { %v431_v7 = vpop.f32.mrb[6].mxu0 }
 0x2b4   :  { %434 = vst [vmem:[#allocation5] sm:$0xff] %v429_v5  ;;  %v494_v8 = vpop.f32.mrb[7].mxu0 }
 0x2b5   :  { %560 = shalt.err (!%p557_p12)
}
 0x2b6   :  { %s561_s2 = scalar_lea.hbm %s675_s3, 128 }
 0x2b7   :  { %p562_p13 = scmp.ne.s32.totalorder %s675_s3, %s561_s2  ;;  %p565_p0 = scmp.lt.u32.totalorder %s561_s2, %s675_s3 }
 0x2b9   :  { %p567_p1 = pnand %p565_p0, %p562_p13 }
 0x2bb   :  { %570 = shalt.err (!%p567_p1)
}
 0x2bc   :  { %444 = dma.vmem_to_hbm [thread:$0]  %s442_s4, 128, %s675_s3, [#allocation4]  }
 0x2bd   :  { %573 = dma.done.wait [#allocation4], 128  }
 0x2be   :  { %574 = vsyncadd [#allocation4], 4294967168 }
 0x2bf   :  { %448 = vsyncpa [#allocation3], 1 }
 0x2c0   :  { %449 = vsyncpa [#allocation4], 1 }

</bundles_post_ra>
